<compile_context>
chip_gen: v5e
topology: v5e:2x2
jax: 0.10.0
libtpu: 0.0.40
codegen_flags: <defaults>
</compile_context>

<pallas_src>
import jax
import jax.numpy as jnp
from jax.experimental import pallas as pl
from jax.experimental.pallas import tpu as pltpu


_LANES = 128


def _round_up(x, m):
    return ((x + m - 1) // m) * m


def _l1_partial_kernel(out_ref, tgt_ref, acc_ref):
    # out_ref / tgt_ref: (tile_rows, 128) input tiles.
    # acc_ref: (1, 128) f32 per-lane partial-sum accumulator, resident in VMEM
    # across the whole (reduction) grid axis.
    @pl.when(pl.program_id(0) == 0)
    def _init():
        acc_ref[...] = jnp.zeros_like(acc_ref)

    o = out_ref[...].astype(jnp.float32)
    t = tgt_ref[...].astype(jnp.float32)
    diff = jnp.abs(o - t)                                    # (tile_rows, 128)
    acc_ref[...] += jnp.sum(diff, axis=0, keepdims=True)     # (1, 128)


def _l1_sum(out_flat, tgt_flat, *, tile_rows=512):
    """Sum of |out - tgt| over a flat, lane-dense (rows, 128) layout."""
    T = out_flat.shape[0]
    rows = pl.cdiv(T, _LANES)
    tr = _round_up(min(tile_rows, rows), 8)   # tile rows (multiple of 8)
    rows_padded = _round_up(rows, tr)
    P = rows_padded * _LANES

    pad = P - T
    if pad:
        # Zero padding is exact for an L1 sum: |0 - 0| contributes nothing.
        out_flat = jnp.pad(out_flat, (0, pad))
        tgt_flat = jnp.pad(tgt_flat, (0, pad))
    out2d = out_flat.reshape(rows_padded, _LANES)
    tgt2d = tgt_flat.reshape(rows_padded, _LANES)

    partials = pl.pallas_call(
        _l1_partial_kernel,
        out_shape=jax.ShapeDtypeStruct((1, _LANES), jnp.float32),
        grid_spec=pltpu.PrefetchScalarGridSpec(
            num_scalar_prefetch=0,
            grid=(rows_padded // tr,),
            in_specs=[
                pl.BlockSpec((tr, _LANES), lambda i: (i, 0)),
                pl.BlockSpec((tr, _LANES), lambda i: (i, 0)),
            ],
            # Same output block every step -> VMEM-resident accumulator.
            out_specs=pl.BlockSpec((1, _LANES), lambda i: (0, 0)),
        ),
        compiler_params=pltpu.CompilerParams(
            dimension_semantics=("arbitrary",)),  # reduction axis
    )(out2d, tgt2d)

    return jnp.sum(partials)


def l1_loss(out, target, weight=None):
    """Forward of the PyTorch L1_Loss module: mean(|out - target|).

    `weight` is accepted for signature compatibility but unused, exactly like
    the original module ("without Instance-aware Guidance").
    """
    T = out.size
    total = _l1_sum(out.reshape(-1), target.reshape(-1))
    return total / jnp.float32(T)


def _reference(out, target):
    return jnp.mean(jnp.abs(out.astype(jnp.float32) - target.astype(jnp.float32)))


if __name__ == "__main__":
    key = jax.random.PRNGKey(0)
    k1, k2 = jax.random.split(key, 2)

    # Offset-map style inputs: (N, C, H, W)
    N, C, H, W = 2, 4, 16, 16
    out = jax.random.normal(k1, (N, C, H, W), dtype=jnp.float32)
    target = jax.random.normal(k2, (N, C, H, W), dtype=jnp.float32)
    weight = jnp.ones((N, C, H, W), dtype=jnp.float32)  # unused by the module

    loss = l1_loss(out, target, weight)
    loss = jax.block_until_ready(loss)

    ref = _reference(out, target)
    assert jnp.allclose(loss, ref, atol=1e-6, rtol=1e-6), (loss, ref)

    print("KERNEL_OK")
</pallas_src>

<mosaic_0001>
module attributes {stable_mosaic.version = 11 : i64} {
  func.func @_l1_partial_kernel(%arg0: i32, %arg1: memref<16x128xf32, #tpu.memory_space<vmem>>, %arg2: memref<16x128xf32, #tpu.memory_space<vmem>>, %arg3: memref<1x128xf32, #tpu.memory_space<vmem>>) attributes {dimension_semantics = [#tpu.dimension_semantics<arbitrary>], iteration_bounds = array<i64: 1>, scalar_prefetch = 0 : i64, scratch_operands = 0 : i64, tpu.core_type = #tpu.core_type<tc>, window_params = [{transform_indices = @transform_0, window_bounds = array<i64: 16, 128>}, {transform_indices = @transform_1, window_bounds = array<i64: 16, 128>}, {pipeline_mode = #tpu.pipeline_mode<synchronous>, transform_indices = @transform_2, window_bounds = array<i64: 1, 128>}]} {
    %c0_i32 = arith.constant 0 : i32
    %0 = arith.cmpi eq, %arg0, %c0_i32 : i32
    %1 = arith.extui %0 : i1 to i32
    %c0_i32_0 = arith.constant 0 : i32
    %2 = arith.cmpi ne, %1, %c0_i32_0 : i32
    scf.if %2 {
      %cst_8 = arith.constant 0.000000e+00 : f32
      %12 = vector.broadcast %cst_8 : f32 to vector<1x128xf32>
      %c0_9 = arith.constant 0 : index
      %c0_10 = arith.constant 0 : index
      %13 = vector.load %arg3[%c0_9, %c0_10] : memref<1x128xf32, #tpu.memory_space<vmem>>, vector<1x128xf32>
      tpu.vector_store %arg3[%c0_9, %c0_10], %12 {strides = array<i32>} : memref<1x128xf32, #tpu.memory_space<vmem>>, vector<1x128xf32>,
    } else {
    }
    %c0 = arith.constant 0 : index
    %c0_1 = arith.constant 0 : index
    %3 = vector.load %arg1[%c0, %c0_1] : memref<16x128xf32, #tpu.memory_space<vmem>>, vector<16x128xf32>
    %c0_2 = arith.constant 0 : index
    %c0_3 = arith.constant 0 : index
    %4 = vector.load %arg2[%c0_2, %c0_3] : memref<16x128xf32, #tpu.memory_space<vmem>>, vector<16x128xf32>
    %5 = arith.subf %3, %4 : vector<16x128xf32>
    %6 = math.absf %5 : vector<16x128xf32>
    %c0_4 = arith.constant 0 : index
    %c0_5 = arith.constant 0 : index
    %7 = vector.load %arg3[%c0_4, %c0_5] : memref<1x128xf32, #tpu.memory_space<vmem>>, vector<1x128xf32>
    %cst = arith.constant dense<0.000000e+00> : vector<128xf32>
    %8 = vector.multi_reduction <add>, %6, %cst [0] : vector<16x128xf32> to vector<128xf32>
    %9 = vector.shape_cast %8 : vector<128xf32> to vector<1x128xf32>
    %10 = arith.addf %7, %9 : vector<1x128xf32>
    %c0_6 = arith.constant 0 : index
    %c0_7 = arith.constant 0 : index
    %11 = vector.load %arg3[%c0_6, %c0_7] : memref<1x128xf32, #tpu.memory_space<vmem>>, vector<1x128xf32>
    tpu.vector_store %arg3[%c0_6, %c0_7], %10 {strides = array<i32>} : memref<1x128xf32, #tpu.memory_space<vmem>>, vector<1x128xf32>,
    return
  }
  func.func @transform_0(%arg0: i32) -> (i32, i32) {
    %c0_i32 = arith.constant 0 : i32
    %c0_i32_0 = arith.constant 0 : i32
    return %arg0, %c0_i32 : i32, i32
  }
  func.func @transform_1(%arg0: i32) -> (i32, i32) {
    %c0_i32 = arith.constant 0 : i32
    %c0_i32_0 = arith.constant 0 : i32
    return %arg0, %c0_i32 : i32, i32
  }
  func.func @transform_2(%arg0: i32) -> (i32, i32) {
    %c0_i32 = arith.constant 0 : i32
    %c0_i32_0 = arith.constant 0 : i32
    %c0_i32_1 = arith.constant 0 : i32
    return %c0_i32, %c0_i32_0 : i32, i32
  }
}

</mosaic_0001>

<bundles_post_ra>
// kernel: tpu_custom_call.1
= control target key start
LH: loop header
LB: loop body
LE: loop exit
PB: predicated region body
PF: predicated region fallthrough
CT: control target
= control target key end

     0   :  { %7 = vsyncpa [#allocation3], 0  ;;  %s199_s0 = inlined_call_operand.hbm [shape: f32[16,128], index: 0, kind: input, shape index: {}]   ;;  %s200_s1 = inlined_call_operand.hbm [shape: f32[16,128], index: 1, kind: input, shape index: {}]   ;;  %s201_s2 = inlined_call_operand.hbm [shape: f32[1,128], index: 2, kind: output, shape index: {}]  }
   0x1   :  { %8 = vsyncpa [#allocation6], 0 }
   0x2   :  { %9 = vsyncpa [#allocation4], 0  ;;  %s14_s11 = sshll.u32 %s199_s0, 4  ;;  %s169_s12 = smov [#allocation2]   ;;  %s15_s11 = int_to_ptr.hbm [resolvable:$true] %s14_s11 }
   0x3   :  { %s16_s13 = sshll.u32 %s169_s12, 4  ;;  %s27_s16 = sshll.u32 %s200_s1, 4  ;;  %s17_s13 = int_to_ptr.vmem [resolvable:$true] %s16_s13  ;;  %s28_s16 = int_to_ptr.hbm [resolvable:$true] %s27_s16 }
   0x4   :  { %s170_s17 = smov 128   ;;  %s171_s18 = smov 8  }
   0x5   :  { %22 = dma.hbm_to_vmem [thread:$0]  %s15_s11, 256, %s17_s13, [#allocation3], %s170_s17, %s170_s17, %s171_s18  }
   0x6   :  { %s172_s19 = smov [#allocation5]  }
   0x7   :  { %s29_s20 = sshll.u32 %s172_s19, 4  ;;  %s30_s20 = int_to_ptr.vmem [resolvable:$true] %s29_s20 }
   0x8   :  { %35 = dma.hbm_to_vmem [thread:$0]  %s28_s16, 256, %s30_s20, [#allocation6], %s170_s17, %s170_s17, %s171_s18  }
   0x9   :  { %163 = dma.done.wait [#allocation3], 256  }
   0xa   :  { %164 = vsyncadd [#allocation3], 4294967040 }
   0xb   :  { %165 = dma.done.wait [#allocation6], 256  }
   0xc   :  { %166 = vsyncadd [#allocation6], 4294967040  ;;  %v173_v0 = vmov 0.0   ;;  %v49_v1 = vld [vmem:[#allocation2] sm:$0xff]  ;;  %v50_v2 = vld [vmem:[#allocation2 + $0x8] sm:$0xff]  ;;  %s174_s0 = smov [#allocation7]  }
   0xd   :  { %48 = vst [vmem:[#allocation7] sm:$0x1] %v173_v0  ;;  %v51_v3 = vld [vmem:[#allocation5] sm:$0xff]  ;;  %v52_v4 = vld [vmem:[#allocation5 + $0x8] sm:$0xff]  ;;  %s72_s1 = sshll.u32 %s174_s0, 4  ;;  %s74_s23 = sshll.u32 %s201_s2, 4  ;;  %s73_s1 = int_to_ptr.vmem [resolvable:$true] %s72_s1  ;;  %s75_s23 = int_to_ptr.hbm [resolvable:$true] %s74_s23 }
   0xe   :  { %v53_v5 = vsub.f32 %v49_v1, %v51_v3  ;;  %v54_v6 = vsub.f32 %v50_v2, %v52_v4 }
  0x10   :  { %v55_v7 = vand.u32 2147483647, %v53_v5  ;;  %v56_v8 = vand.u32 2147483647, %v54_v6 }
  0x12   :  { %v58_v9 = vadd.f32 %v56_v8, %v55_v7 }
  0x14   :  { %v59_v10 = vrot.slane %v58_v9, 4  ;;  %v57_v15 = vld [vmem:[#allocation7] sm:$0x1] }
  0x16   :  { %v60_v11 = vadd.f32 %v59_v10, %v58_v9 }
  0x18   :  { %v61_v12 = vrot.slane %v60_v11, 2 }
  0x1a   :  { %v62_v13 = vadd.f32 %v61_v12, %v60_v11 }
  0x1c   :  { %v63_v14 = vrot.slane %v62_v13, 1 }
  0x1e   :  { %v64_v16 = vadd.f32 %v63_v14, %v62_v13 }
  0x20   :  { %v65_v17 = vadd.f32 %v64_v16, %v57_v15 }
  0x22   :  { %66 = vst [vmem:[#allocation7] sm:$0x1] %v65_v17 }
  0x23   :  { %77 = dma.vmem_to_hbm [thread:$0]  %s73_s1, 16, %s75_s23, [#allocation4]  }
  0x24   :  { %167 = dma.done.wait [#allocation4], 16  }
  0x25   :  { %168 = vsyncadd [#allocation4], 4294967280 }
  0x26   :  { %82 = vsyncpa [#allocation3], 1 }
  0x27   :  { %83 = vsyncpa [#allocation6], 1 }
  0x28   :  { %84 = vsyncpa [#allocation4], 1 }

</bundles_post_ra>
